<compile_context>
chip_gen: v6e
topology: v6e:2x2x1
jax: 0.10.0
libtpu: 0.0.40
codegen_flags: <defaults>
</compile_context>

<pallas_src>
import functools

import jax
import jax.numpy as jnp
import numpy as np
from jax.experimental import pallas as pl
from jax.experimental.pallas import tpu as pltpu


def _lstm_block_kernel(x_ref, hs_ref, cs_ref, wx_ref, wh_ref, b_ref,
                       who_w_hbm, who_b_hbm,
                       out_ref, hs_out_ref, cs_out_ref,
                       x_carry, who_w_buf, who_b_buf, who_sem,
                       *, layers_per_block, hidden):
    """One grid step == `layers_per_block` LSTM layers (statically unrolled).

    x is carried layer-to-layer in registers within a block and in a VMEM
    scratch across grid steps.
    """
    blk = pl.program_id(0)
    last_blk = pl.num_programs(0) - 1
    L, H = layers_per_block, hidden
    cdt = x_carry.dtype                      # MXU input dtype (bf16 when streamed)

    @pl.when(blk == 0)
    def _():
        x_carry[...] = x_ref[...].astype(cdt)
        # Constant-index output block: zero-init as insurance against any
        # intermediate writeback before the final write on the last step.
        out_ref[...] = jnp.zeros_like(out_ref)

    # Start the readout-weight DMA one grid step early (or at the top of the
    # only step) so the wait on the last step never serializes the tail.  The
    # landing buffers are persistent scratch, so there is no conflict with the
    # gate-weight double buffer.
    @pl.when(blk == jnp.maximum(last_blk - 1, 0))
    def _():
        pltpu.make_async_copy(who_w_hbm, who_w_buf, who_sem.at[0]).start()
        pltpu.make_async_copy(who_b_hbm, who_b_buf, who_sem.at[1]).start()

    x = x_carry[...]                         # (B, H) compute dtype
    for l in range(L):                       # static unroll over blocked layers
        h = hs_ref[l].astype(cdt)            # (B, H)
        c = cs_ref[l].astype(jnp.float32)    # (B, H) f32 cell state
        # Two wide MXU dots per layer -> (B, 4H) pre-activation, f32 acc.
        pre = (jnp.dot(x, wx_ref[l], preferred_element_type=jnp.float32)
               + jnp.dot(h, wh_ref[l], preferred_element_type=jnp.float32)
               + b_ref[l].astype(jnp.float32))
        # Gate order along 4H: [f | i | o | g]; H-aligned lane slices.
        f_t = jax.nn.sigmoid(pre[:, 0 * H:1 * H])
        i_t = jax.nn.sigmoid(pre[:, 1 * H:2 * H])
        o_t = jax.nn.sigmoid(pre[:, 2 * H:3 * H])
        g_t = jnp.tanh(pre[:, 3 * H:4 * H])

        c_t = f_t * c + i_t * g_t
        h_t = o_t * jnp.tanh(c_t)

        hs_out_ref[l] = h_t.astype(hs_out_ref.dtype)
        cs_out_ref[l] = c_t.astype(cs_out_ref.dtype)
        x = h_t.astype(cdt)

    # Carry h to the next block; the store is dead on the last block.
    @pl.when(blk < last_blk)
    def _():
        x_carry[...] = x

    @pl.when(blk == last_blk)
    def _():
        pltpu.make_async_copy(who_w_hbm, who_w_buf, who_sem.at[0]).wait()
        pltpu.make_async_copy(who_b_hbm, who_b_buf, who_sem.at[1]).wait()
        proj = (jnp.dot(x.astype(who_w_buf.dtype), who_w_buf[...],
                        preferred_element_type=jnp.float32)
                + who_b_buf[...].astype(jnp.float32))
        out_ref[...] = jnp.tanh(proj).astype(out_ref.dtype)


def _physical_vmem_cap_bytes():
    """Physical VMEM capacity minus headroom; falls back to v7x's 64 MiB."""
    try:
        info = pltpu.get_tpu_info()
        cap = int(getattr(info, "vmem_capacity_bytes", 64 << 20))
    except Exception:
        cap = 64 << 20
    return max(cap - (8 << 20), 16 << 20)


def _block_footprint_bytes(L, B, H, state_itemsize, w_itemsize):
    per_layer_blocks = ((2 * H * 4 * H + 4 * H) * w_itemsize   # Wx + Wh + bias
                        + 4 * B * H * state_itemsize)          # hs,cs in + out
    resident = (2 * B * H * state_itemsize                     # x block + out block
                + B * H * w_itemsize                           # x carry scratch
                + H * H * w_itemsize + 4 * H)                  # who_w/who_b buffers
    return 2 * L * per_layer_blocks + resident                 # 2x: double-buffered


def _choose_layers_per_block(N, B, H, state_itemsize, w_itemsize, budget):
    """Small H: amortize per-grid-step overhead across as many layers as fit.
    Large H: keep one layer per step so weight streaming stays double-buffered."""
    if H > 256:
        return 1
    best = 1
    for L in range(1, N + 1):
        if N % L == 0 and _block_footprint_bytes(L, B, H, state_itemsize,
                                                 w_itemsize) <= budget:
            best = L
    return best


def _vmem_limit_bytes(L, B, H, state_itemsize, w_itemsize, cap):
    est = _block_footprint_bytes(L, B, H, state_itemsize, w_itemsize)
    return int(min(cap, max(est + (8 << 20), 16 << 20)))


def lstm_forward_layers_first(x, hs_l, cs_l, gate_wx, gate_wh, gate_b,
                              who_w, who_b, *, layers_per_block=None):
    """x: [B,H];  hs_l, cs_l: [N,B,H] (layers-first, transpose-free path).

    gate_wx, gate_wh: [N, H, 4H] fused per-layer x-half / h-half gate weights
    (gate order [f|i|o|g] along the 4H axis), gate_b: [N, 1, 4H],
    who_w: [H, H], who_b: [1, H].  Weights may be bf16 (recommended);
    accumulation is always f32.
    Returns (out [B,H], hs_t [N,B,H], cs_t [N,B,H]).
    """
    B, H = x.shape
    N, Bh, Hh = hs_l.shape
    assert (Bh, Hh) == (B, H)
    assert gate_wx.shape == (N, H, 4 * H) and gate_wh.shape == (N, H, 4 * H)
    assert gate_b.shape == (N, 1, 4 * H)
    assert who_w.shape == (H, H) and who_b.shape == (1, H)

    w_dtype = gate_wx.dtype
    s_it = jnp.dtype(hs_l.dtype).itemsize
    w_it = jnp.dtype(w_dtype).itemsize
    cap = _physical_vmem_cap_bytes()
    L = layers_per_block or _choose_layers_per_block(N, B, H, s_it, w_it, cap)
    assert N % L == 0, "layers_per_block must divide n_layers"
    vmem_limit = _vmem_limit_bytes(L, B, H, s_it, w_it, cap)

    kernel = functools.partial(_lstm_block_kernel,
                               layers_per_block=L, hidden=H)

    out, hs_t, cs_t = pl.pallas_call(
        kernel,
        out_shape=(
            jax.ShapeDtypeStruct((B, H), x.dtype),
            jax.ShapeDtypeStruct((N, B, H), hs_l.dtype),
            jax.ShapeDtypeStruct((N, B, H), cs_l.dtype),
        ),
        grid_spec=pltpu.PrefetchScalarGridSpec(
            num_scalar_prefetch=0,
            grid=(N // L,),
            in_specs=[
                pl.BlockSpec((B, H), lambda i: (0, 0)),              # x
                pl.BlockSpec((L, B, H), lambda i: (i, 0, 0)),        # hs
                pl.BlockSpec((L, B, H), lambda i: (i, 0, 0)),        # cs
                pl.BlockSpec((L, H, 4 * H), lambda i: (i, 0, 0)),    # fused Wx
                pl.BlockSpec((L, H, 4 * H), lambda i: (i, 0, 0)),    # fused Wh
                pl.BlockSpec((L, 1, 4 * H), lambda i: (i, 0, 0)),    # fused bias
                pl.BlockSpec(memory_space=pl.ANY),                   # who_w (HBM)
                pl.BlockSpec(memory_space=pl.ANY),                   # who_b (HBM)
            ],
            out_specs=[
                pl.BlockSpec((B, H), lambda i: (0, 0)),              # out
                pl.BlockSpec((L, B, H), lambda i: (i, 0, 0)),        # hs_t
                pl.BlockSpec((L, B, H), lambda i: (i, 0, 0)),        # cs_t
            ],
            scratch_shapes=[
                pltpu.VMEM((B, H), w_dtype),        # x carry (compute dtype)
                pltpu.VMEM((H, H), who_w.dtype),    # who_w landing buffer
                pltpu.VMEM((1, H), who_b.dtype),    # who_b landing buffer
                pltpu.SemaphoreType.DMA((2,)),
            ],
        ),
        # hs -> hs_t, cs -> cs_t updated in place.
        input_output_aliases={1: 1, 2: 2},
        compiler_params=pltpu.CompilerParams(
            dimension_semantics=("arbitrary",),     # layer loop is serial (x carry)
            vmem_limit_bytes=vmem_limit),
    )(x, hs_l, cs_l, gate_wx, gate_wh, gate_b, who_w, who_b)
    return out, hs_t, cs_t


def lstm_forward(x, hs, cs, gate_wx, gate_wh, gate_b, who_w, who_b,
                 *, layers_per_block=None):
    """PyTorch-convention wrapper: hs, cs are [B, N, H]; returns the same
    layout.  Prefer lstm_forward_layers_first to avoid the transposes."""
    out, hs_t, cs_t = lstm_forward_layers_first(
        x, jnp.transpose(hs, (1, 0, 2)), jnp.transpose(cs, (1, 0, 2)),
        gate_wx, gate_wh, gate_b, who_w, who_b,
        layers_per_block=layers_per_block)
    return out, jnp.transpose(hs_t, (1, 0, 2)), jnp.transpose(cs_t, (1, 0, 2))


def init_params(key, n_layers, hidden_size):
    """Deterministic init mirroring nn.Linear defaults (uniform +-1/sqrt(fan_in)).

    Gate order along the fused 4H axis: [forget, input, output, hidden(g)].
    NOTE: this differs from torch.nn.LSTM's [i,f,g,o]; importers must repack.
    """
    H = hidden_size
    keys = jax.random.split(key, 5)
    k_gate = 1.0 / np.sqrt(2 * H)
    k_who = 1.0 / np.sqrt(H)
    gate_wx = jax.random.uniform(keys[0], (n_layers, H, 4 * H),
                                 jnp.float32, -k_gate, k_gate)
    gate_wh = jax.random.uniform(keys[1], (n_layers, H, 4 * H),
                                 jnp.float32, -k_gate, k_gate)
    gate_b = jax.random.uniform(keys[2], (n_layers, 1, 4 * H),
                                jnp.float32, -k_gate, k_gate)
    who_w = jax.random.uniform(keys[3], (H, H), jnp.float32, -k_who, k_who)
    who_b = jax.random.uniform(keys[4], (1, H), jnp.float32, -k_who, k_who)
    return gate_wx, gate_wh, gate_b, who_w, who_b


def lstm_reference(x, hs, cs, gate_wx, gate_wh, gate_b, who_w, who_b):
    """Pure-JAX (f32) reference of the PyTorch forward. hs/cs are [B,N,H]."""
    N = hs.shape[1]
    H = x.shape[1]
    wx = gate_wx.astype(jnp.float32)
    wh = gate_wh.astype(jnp.float32)
    b = gate_b.astype(jnp.float32)
    hs_out, cs_out = [], []
    for l in range(N):
        h, c = hs[:, l, :], cs[:, l, :]
        pre = x @ wx[l] + h @ wh[l] + b[l]
        f_t = jax.nn.sigmoid(pre[:, 0 * H:1 * H])
        i_t = jax.nn.sigmoid(pre[:, 1 * H:2 * H])
        o_t = jax.nn.sigmoid(pre[:, 2 * H:3 * H])
        g_t = jnp.tanh(pre[:, 3 * H:4 * H])
        c_t = f_t * c + i_t * g_t
        h_t = o_t * jnp.tanh(c_t)
        hs_out.append(h_t)
        cs_out.append(c_t)
        x = h_t
    out = jnp.tanh(x @ who_w.astype(jnp.float32) + who_b.astype(jnp.float32))
    return out, jnp.stack(hs_out, axis=1), jnp.stack(cs_out, axis=1)


if __name__ == "__main__":
    B, N, H = 2, 3, 32
    key = jax.random.PRNGKey(0)
    k_x, k_h, k_c, k_p = jax.random.split(key, 4)

    x = jax.random.normal(k_x, (B, H), jnp.float32)
    hs = jax.random.normal(k_h, (B, N, H), jnp.float32)
    cs = jax.random.normal(k_c, (B, N, H), jnp.float32)
    gate_wx, gate_wh, gate_b, who_w, who_b = init_params(k_p, N, H)

    out_r, hs_r, cs_r = lstm_reference(x, hs, cs, gate_wx, gate_wh, gate_b,
                                       who_w, who_b)

    # 1) f32 weights, auto layers-per-block (all layers in one grid step):
    out, hs_t, cs_t = lstm_forward(x, hs, cs, gate_wx, gate_wh, gate_b,
                                   who_w, who_b)
    jax.block_until_ready((out, hs_t, cs_t))
    np.testing.assert_allclose(np.asarray(out), np.asarray(out_r),
                               atol=1e-5, rtol=1e-5)
    np.testing.assert_allclose(np.asarray(hs_t), np.asarray(hs_r),
                               atol=1e-5, rtol=1e-5)
    np.testing.assert_allclose(np.asarray(cs_t), np.asarray(cs_r),
                               atol=1e-5, rtol=1e-5)

    # 2) f32 weights, forced one-layer-per-step streaming path (grid=(N,)):
    out1, hs1, cs1 = lstm_forward(x, hs, cs, gate_wx, gate_wh, gate_b,
                                  who_w, who_b, layers_per_block=1)
    jax.block_until_ready((out1, hs1, cs1))
    np.testing.assert_allclose(np.asarray(out1), np.asarray(out_r),
                               atol=1e-5, rtol=1e-5)
    np.testing.assert_allclose(np.asarray(hs1), np.asarray(hs_r),
                               atol=1e-5, rtol=1e-5)
    np.testing.assert_allclose(np.asarray(cs1), np.asarray(cs_r),
                               atol=1e-5, rtol=1e-5)

    # 3) bf16-streamed weights (the performance configuration): compare against
    #    an f32 reference using the same bf16-rounded weights; tolerance covers
    #    bf16 rounding of the MXU inputs and the bf16 inter-layer carry.
    wx16 = gate_wx.astype(jnp.bfloat16)
    wh16 = gate_wh.astype(jnp.bfloat16)
    whow16 = who_w.astype(jnp.bfloat16)
    out16, hs16, cs16 = lstm_forward(x, hs, cs, wx16, wh16, gate_b,
                                     whow16, who_b)
    jax.block_until_ready((out16, hs16, cs16))
    out_r16, hs_r16, cs_r16 = lstm_reference(
        x, hs, cs, wx16.astype(jnp.float32), wh16.astype(jnp.float32), gate_b,
        whow16.astype(jnp.float32), who_b)
    np.testing.assert_allclose(np.asarray(out16), np.asarray(out_r16),
                               atol=3e-2, rtol=3e-2)
    np.testing.assert_allclose(np.asarray(hs16), np.asarray(hs_r16),
                               atol=3e-2, rtol=3e-2)
    np.testing.assert_allclose(np.asarray(cs16), np.asarray(cs_r16),
                               atol=3e-2, rtol=3e-2)

    print("KERNEL_OK")
</pallas_src>

<mosaic_0001>
module attributes {stable_mosaic.version = 11 : i64} {
  func.func @_lstm_block_kernel(%arg0: i32, %arg1: memref<2x32xf32, #tpu.memory_space<vmem>>, %arg2: memref<3x2x32xf32, #tpu.memory_space<vmem>>, %arg3: memref<3x2x32xf32, #tpu.memory_space<vmem>>, %arg4: memref<3x32x128xf32, #tpu.memory_space<vmem>>, %arg5: memref<3x32x128xf32, #tpu.memory_space<vmem>>, %arg6: memref<3x1x128xf32, #tpu.memory_space<vmem>>, %arg7: memref<32x32xf32, #tpu.memory_space<any>>, %arg8: memref<1x32xf32, #tpu.memory_space<any>>, %arg9: memref<2x32xf32, #tpu.memory_space<vmem>>, %arg10: memref<3x2x32xf32, #tpu.memory_space<vmem>>, %arg11: memref<3x2x32xf32, #tpu.memory_space<vmem>>, %arg12: memref<2x32xf32, #tpu.memory_space<vmem>>, %arg13: memref<32x32xf32, #tpu.memory_space<vmem>>, %arg14: memref<1x32xf32, #tpu.memory_space<vmem>>, %arg15: memref<2x!tpu.dma_semaphore, #tpu.memory_space<semaphore_mem>>) attributes {dimension_semantics = [#tpu.dimension_semantics<arbitrary>], iteration_bounds = array<i64: 1>, scalar_prefetch = 0 : i64, scratch_operands = 4 : i64, tpu.core_type = #tpu.core_type<tc>, window_params = [{pipeline_mode = #tpu.pipeline_mode<synchronous>, transform_indices = @transform_0, window_bounds = array<i64: 2, 32>}, {transform_indices = @transform_1, window_bounds = array<i64: 3, 2, 32>}, {transform_indices = @transform_2, window_bounds = array<i64: 3, 2, 32>}, {transform_indices = @transform_3, window_bounds = array<i64: 3, 32, 128>}, {transform_indices = @transform_4, window_bounds = array<i64: 3, 32, 128>}, {transform_indices = @transform_5, window_bounds = array<i64: 3, 1, 128>}, {}, {}, {pipeline_mode = #tpu.pipeline_mode<synchronous>, transform_indices = @transform_8, window_bounds = array<i64: 2, 32>}, {transform_indices = @transform_9, window_bounds = array<i64: 3, 2, 32>}, {transform_indices = @transform_10, window_bounds = array<i64: 3, 2, 32>}]} {
    %c0_i32 = arith.constant 0 : i32
    %0 = arith.cmpi eq, %arg0, %c0_i32 : i32
    %1 = arith.extui %0 : i1 to i32
    %c0_i32_0 = arith.constant 0 : i32
    %2 = arith.cmpi ne, %1, %c0_i32_0 : i32
    scf.if %2 {
      %c0_83 = arith.constant 0 : index
      %c0_84 = arith.constant 0 : index
      %152 = vector.load %arg1[%c0_83, %c0_84] : memref<2x32xf32, #tpu.memory_space<vmem>>, vector<2x32xf32>
      %c0_85 = arith.constant 0 : index
      %c0_86 = arith.constant 0 : index
      %153 = vector.load %arg12[%c0_85, %c0_86] : memref<2x32xf32, #tpu.memory_space<vmem>>, vector<2x32xf32>
      tpu.vector_store %arg12[%c0_85, %c0_86], %152 {strides = array<i32>} : memref<2x32xf32, #tpu.memory_space<vmem>>, vector<2x32xf32>,
      %cst_87 = arith.constant 0.000000e+00 : f32
      %154 = vector.broadcast %cst_87 : f32 to vector<2x32xf32>
      %c0_88 = arith.constant 0 : index
      %c0_89 = arith.constant 0 : index
      %155 = vector.load %arg9[%c0_88, %c0_89] : memref<2x32xf32, #tpu.memory_space<vmem>>, vector<2x32xf32>
      tpu.vector_store %arg9[%c0_88, %c0_89], %154 {strides = array<i32>} : memref<2x32xf32, #tpu.memory_space<vmem>>, vector<2x32xf32>,
    } else {
    }
    %c-1_i32 = arith.constant -1 : i32
    %c0_i32_1 = arith.constant 0 : i32
    %3 = arith.maxsi %c-1_i32, %c0_i32_1 : i32
    %4 = arith.cmpi eq, %arg0, %3 : i32
    %5 = arith.extui %4 : i1 to i32
    %c0_i32_2 = arith.constant 0 : i32
    %6 = arith.cmpi ne, %5, %c0_i32_2 : i32
    scf.if %6 {
      %c0_i32_83 = arith.constant 0 : i32
      %152 = tpu.memref_slice %arg15[%c0_i32_83] : memref<2x!tpu.dma_semaphore, #tpu.memory_space<semaphore_mem>> -> memref<1x!tpu.dma_semaphore, #tpu.memory_space<semaphore_mem>>
      %153 = tpu.memref_squeeze %152 : memref<1x!tpu.dma_semaphore, #tpu.memory_space<semaphore_mem>> -> memref<!tpu.dma_semaphore, #tpu.memory_space<semaphore_mem>>
      tpu.enqueue_dma source(%arg7 : memref<32x32xf32, #tpu.memory_space<any>>) target(%arg13 : memref<32x32xf32, #tpu.memory_space<vmem>>) target_semaphore(%153 : memref<!tpu.dma_semaphore, #tpu.memory_space<semaphore_mem>>)
      %c1_i32 = arith.constant 1 : i32
      %154 = tpu.memref_slice %arg15[%c1_i32] : memref<2x!tpu.dma_semaphore, #tpu.memory_space<semaphore_mem>> -> memref<1x!tpu.dma_semaphore, #tpu.memory_space<semaphore_mem>>
      %155 = tpu.memref_squeeze %154 : memref<1x!tpu.dma_semaphore, #tpu.memory_space<semaphore_mem>> -> memref<!tpu.dma_semaphore, #tpu.memory_space<semaphore_mem>>
      tpu.enqueue_dma source(%arg8 : memref<1x32xf32, #tpu.memory_space<any>>) target(%arg14 : memref<1x32xf32, #tpu.memory_space<vmem>>) target_semaphore(%155 : memref<!tpu.dma_semaphore, #tpu.memory_space<semaphore_mem>>)
    } else {
    }
    %c0 = arith.constant 0 : index
    %c0_3 = arith.constant 0 : index
    %7 = vector.load %arg12[%c0, %c0_3] : memref<2x32xf32, #tpu.memory_space<vmem>>, vector<2x32xf32>
    %c0_4 = arith.constant 0 : index
    %c0_5 = arith.constant 0 : index
    %c0_6 = arith.constant 0 : index
    %8 = vector.load %arg2[%c0_4, %c0_5, %c0_6] : memref<3x2x32xf32, #tpu.memory_space<vmem>>, vector<1x2x32xf32>
    %9 = vector.shape_cast %8 : vector<1x2x32xf32> to vector<2x32xf32>
    %c0_7 = arith.constant 0 : index
    %c0_8 = arith.constant 0 : index
    %c0_9 = arith.constant 0 : index
    %10 = vector.load %arg3[%c0_7, %c0_8, %c0_9] : memref<3x2x32xf32, #tpu.memory_space<vmem>>, vector<1x2x32xf32>
    %11 = vector.shape_cast %10 : vector<1x2x32xf32> to vector<2x32xf32>
    %c0_10 = arith.constant 0 : index
    %c0_11 = arith.constant 0 : index
    %c0_12 = arith.constant 0 : index
    %12 = vector.load %arg4[%c0_10, %c0_11, %c0_12] : memref<3x32x128xf32, #tpu.memory_space<vmem>>, vector<1x32x128xf32>
    %13 = vector.shape_cast %12 : vector<1x32x128xf32> to vector<32x128xf32>
    %cst = arith.constant dense<0.000000e+00> : vector<2x128xf32>
    %14 = tpu.matmul %7, %13, %cst {dimension_numbers = #tpu.dot_dimension_numbers<[1], [0], [0], [1], [0, 0, 1, 1], [], []>} : vector<2x32xf32>, vector<32x128xf32>, vector<2x128xf32> -> vector<2x128xf32>
    %c0_13 = arith.constant 0 : index
    %c0_14 = arith.constant 0 : index
    %c0_15 = arith.constant 0 : index
    %15 = vector.load %arg5[%c0_13, %c0_14, %c0_15] : memref<3x32x128xf32, #tpu.memory_space<vmem>>, vector<1x32x128xf32>
    %16 = vector.shape_cast %15 : vector<1x32x128xf32> to vector<32x128xf32>
    %cst_16 = arith.constant dense<0.000000e+00> : vector<2x128xf32>
    %17 = tpu.matmul %9, %16, %cst_16 {dimension_numbers = #tpu.dot_dimension_numbers<[1], [0], [0], [1], [0, 0, 1, 1], [], []>} : vector<2x32xf32>, vector<32x128xf32>, vector<2x128xf32> -> vector<2x128xf32>
    %18 = arith.addf %14, %17 : vector<2x128xf32>
    %c0_17 = arith.constant 0 : index
    %c0_18 = arith.constant 0 : index
    %c0_19 = arith.constant 0 : index
    %19 = vector.load %arg6[%c0_17, %c0_18, %c0_19] : memref<3x1x128xf32, #tpu.memory_space<vmem>>, vector<1x1x128xf32>
    %20 = vector.shape_cast %19 : vector<1x1x128xf32> to vector<1x128xf32>
    %21 = vector.broadcast %20 : vector<1x128xf32> to vector<2x128xf32>
    %22 = arith.addf %18, %21 : vector<2x128xf32>
    %23 = vector.extract_strided_slice %22 {offsets = [0, 0], sizes = [2, 32], strides = [1, 1]} : vector<2x128xf32> to vector<2x32xf32>
    %24 = arith.negf %23 : vector<2x32xf32>
    %25 = math.exp %24 : vector<2x32xf32>
    %cst_20 = arith.constant 1.000000e+00 : f32
    %26 = vector.broadcast %cst_20 : f32 to vector<2x32xf32>
    %27 = arith.addf %26, %25 : vector<2x32xf32>
    %28 = arith.divf %26, %27 : vector<2x32xf32>
    %29 = vector.extract_strided_slice %22 {offsets = [0, 32], sizes = [2, 32], strides = [1, 1]} : vector<2x128xf32> to vector<2x32xf32>
    %30 = arith.negf %29 : vector<2x32xf32>
    %31 = math.exp %30 : vector<2x32xf32>
    %cst_21 = arith.constant 1.000000e+00 : f32
    %32 = vector.broadcast %cst_21 : f32 to vector<2x32xf32>
    %33 = arith.addf %32, %31 : vector<2x32xf32>
    %34 = arith.divf %32, %33 : vector<2x32xf32>
    %35 = vector.extract_strided_slice %22 {offsets = [0, 64], sizes = [2, 32], strides = [1, 1]} : vector<2x128xf32> to vector<2x32xf32>
    %36 = arith.negf %35 : vector<2x32xf32>
    %37 = math.exp %36 : vector<2x32xf32>
    %cst_22 = arith.constant 1.000000e+00 : f32
    %38 = vector.broadcast %cst_22 : f32 to vector<2x32xf32>
    %39 = arith.addf %38, %37 : vector<2x32xf32>
    %40 = arith.divf %38, %39 : vector<2x32xf32>
    %41 = vector.extract_strided_slice %22 {offsets = [0, 96], sizes = [2, 32], strides = [1, 1]} : vector<2x128xf32> to vector<2x32xf32>
    %42 = math.tanh %41 : vector<2x32xf32>
    %43 = arith.mulf %28, %11 : vector<2x32xf32>
    %44 = arith.mulf %34, %42 : vector<2x32xf32>
    %45 = arith.addf %43, %44 : vector<2x32xf32>
    %46 = math.tanh %45 : vector<2x32xf32>
    %47 = arith.mulf %40, %46 : vector<2x32xf32>
    %c0_23 = arith.constant 0 : index
    %c0_24 = arith.constant 0 : index
    %c0_25 = arith.constant 0 : index
    %48 = vector.load %arg10[%c0_23, %c0_24, %c0_25] : memref<3x2x32xf32, #tpu.memory_space<vmem>>, vector<1x2x32xf32>
    %49 = vector.shape_cast %48 : vector<1x2x32xf32> to vector<2x32xf32>
    %50 = vector.shape_cast %47 : vector<2x32xf32> to vector<1x2x32xf32>
    tpu.vector_store %arg10[%c0_23, %c0_24, %c0_25], %50 {strides = array<i32>} : memref<3x2x32xf32, #tpu.memory_space<vmem>>, vector<1x2x32xf32>,
    %c0_26 = arith.constant 0 : index
    %c0_27 = arith.constant 0 : index
    %c0_28 = arith.constant 0 : index
    %51 = vector.load %arg11[%c0_26, %c0_27, %c0_28] : memref<3x2x32xf32, #tpu.memory_space<vmem>>, vector<1x2x32xf32>
    %52 = vector.shape_cast %51 : vector<1x2x32xf32> to vector<2x32xf32>
    %53 = vector.shape_cast %45 : vector<2x32xf32> to vector<1x2x32xf32>
    tpu.vector_store %arg11[%c0_26, %c0_27, %c0_28], %53 {strides = array<i32>} : memref<3x2x32xf32, #tpu.memory_space<vmem>>, vector<1x2x32xf32>,
    %c1 = arith.constant 1 : index
    %c0_29 = arith.constant 0 : index
    %c0_30 = arith.constant 0 : index
    %54 = vector.load %arg2[%c1, %c0_29, %c0_30] : memref<3x2x32xf32, #tpu.memory_space<vmem>>, vector<1x2x32xf32>
    %55 = vector.shape_cast %54 : vector<1x2x32xf32> to vector<2x32xf32>
    %c1_31 = arith.constant 1 : index
    %c0_32 = arith.constant 0 : index
    %c0_33 = arith.constant 0 : index
    %56 = vector.load %arg3[%c1_31, %c0_32, %c0_33] : memref<3x2x32xf32, #tpu.memory_space<vmem>>, vector<1x2x32xf32>
    %57 = vector.shape_cast %56 : vector<1x2x32xf32> to vector<2x32xf32>
    %c1_34 = arith.constant 1 : index
    %c0_35 = arith.constant 0 : index
    %c0_36 = arith.constant 0 : index
    %58 = vector.load %arg4[%c1_34, %c0_35, %c0_36] : memref<3x32x128xf32, #tpu.memory_space<vmem>>, vector<1x32x128xf32>
    %59 = vector.shape_cast %58 : vector<1x32x128xf32> to vector<32x128xf32>
    %cst_37 = arith.constant dense<0.000000e+00> : vector<2x128xf32>
    %60 = tpu.matmul %47, %59, %cst_37 {dimension_numbers = #tpu.dot_dimension_numbers<[1], [0], [0], [1], [0, 0, 1, 1], [], []>} : vector<2x32xf32>, vector<32x128xf32>, vector<2x128xf32> -> vector<2x128xf32>
    %c1_38 = arith.constant 1 : index
    %c0_39 = arith.constant 0 : index
    %c0_40 = arith.constant 0 : index
    %61 = vector.load %arg5[%c1_38, %c0_39, %c0_40] : memref<3x32x128xf32, #tpu.memory_space<vmem>>, vector<1x32x128xf32>
    %62 = vector.shape_cast %61 : vector<1x32x128xf32> to vector<32x128xf32>
    %cst_41 = arith.constant dense<0.000000e+00> : vector<2x128xf32>
    %63 = tpu.matmul %55, %62, %cst_41 {dimension_numbers = #tpu.dot_dimension_numbers<[1], [0], [0], [1], [0, 0, 1, 1], [], []>} : vector<2x32xf32>, vector<32x128xf32>, vector<2x128xf32> -> vector<2x128xf32>
    %64 = arith.addf %60, %63 : vector<2x128xf32>
    %c1_42 = arith.constant 1 : index
    %c0_43 = arith.constant 0 : index
    %c0_44 = arith.constant 0 : index
    %65 = vector.load %arg6[%c1_42, %c0_43, %c0_44] : memref<3x1x128xf32, #tpu.memory_space<vmem>>, vector<1x1x128xf32>
    %66 = vector.shape_cast %65 : vector<1x1x128xf32> to vector<1x128xf32>
    %67 = vector.broadcast %66 : vector<1x128xf32> to vector<2x128xf32>
    %68 = arith.addf %64, %67 : vector<2x128xf32>
    %69 = vector.extract_strided_slice %68 {offsets = [0, 0], sizes = [2, 32], strides = [1, 1]} : vector<2x128xf32> to vector<2x32xf32>
    %70 = arith.negf %69 : vector<2x32xf32>
    %71 = math.exp %70 : vector<2x32xf32>
    %cst_45 = arith.constant 1.000000e+00 : f32
    %72 = vector.broadcast %cst_45 : f32 to vector<2x32xf32>
    %73 = arith.addf %72, %71 : vector<2x32xf32>
    %74 = arith.divf %72, %73 : vector<2x32xf32>
    %75 = vector.extract_strided_slice %68 {offsets = [0, 32], sizes = [2, 32], strides = [1, 1]} : vector<2x128xf32> to vector<2x32xf32>
    %76 = arith.negf %75 : vector<2x32xf32>
    %77 = math.exp %76 : vector<2x32xf32>
    %cst_46 = arith.constant 1.000000e+00 : f32
    %78 = vector.broadcast %cst_46 : f32 to vector<2x32xf32>
    %79 = arith.addf %78, %77 : vector<2x32xf32>
    %80 = arith.divf %78, %79 : vector<2x32xf32>
    %81 = vector.extract_strided_slice %68 {offsets = [0, 64], sizes = [2, 32], strides = [1, 1]} : vector<2x128xf32> to vector<2x32xf32>
    %82 = arith.negf %81 : vector<2x32xf32>
    %83 = math.exp %82 : vector<2x32xf32>
    %cst_47 = arith.constant 1.000000e+00 : f32
    %84 = vector.broadcast %cst_47 : f32 to vector<2x32xf32>
    %85 = arith.addf %84, %83 : vector<2x32xf32>
    %86 = arith.divf %84, %85 : vector<2x32xf32>
    %87 = vector.extract_strided_slice %68 {offsets = [0, 96], sizes = [2, 32], strides = [1, 1]} : vector<2x128xf32> to vector<2x32xf32>
    %88 = math.tanh %87 : vector<2x32xf32>
    %89 = arith.mulf %74, %57 : vector<2x32xf32>
    %90 = arith.mulf %80, %88 : vector<2x32xf32>
    %91 = arith.addf %89, %90 : vector<2x32xf32>
    %92 = math.tanh %91 : vector<2x32xf32>
    %93 = arith.mulf %86, %92 : vector<2x32xf32>
    %c1_48 = arith.constant 1 : index
    %c0_49 = arith.constant 0 : index
    %c0_50 = arith.constant 0 : index
    %94 = vector.load %arg10[%c1_48, %c0_49, %c0_50] : memref<3x2x32xf32, #tpu.memory_space<vmem>>, vector<1x2x32xf32>
    %95 = vector.shape_cast %94 : vector<1x2x32xf32> to vector<2x32xf32>
    %96 = vector.shape_cast %93 : vector<2x32xf32> to vector<1x2x32xf32>
    tpu.vector_store %arg10[%c1_48, %c0_49, %c0_50], %96 {strides = array<i32>} : memref<3x2x32xf32, #tpu.memory_space<vmem>>, vector<1x2x32xf32>,
    %c1_51 = arith.constant 1 : index
    %c0_52 = arith.constant 0 : index
    %c0_53 = arith.constant 0 : index
    %97 = vector.load %arg11[%c1_51, %c0_52, %c0_53] : memref<3x2x32xf32, #tpu.memory_space<vmem>>, vector<1x2x32xf32>
    %98 = vector.shape_cast %97 : vector<1x2x32xf32> to vector<2x32xf32>
    %99 = vector.shape_cast %91 : vector<2x32xf32> to vector<1x2x32xf32>
    tpu.vector_store %arg11[%c1_51, %c0_52, %c0_53], %99 {strides = array<i32>} : memref<3x2x32xf32, #tpu.memory_space<vmem>>, vector<1x2x32xf32>,
    %c2 = arith.constant 2 : index
    %c0_54 = arith.constant 0 : index
    %c0_55 = arith.constant 0 : index
    %100 = vector.load %arg2[%c2, %c0_54, %c0_55] : memref<3x2x32xf32, #tpu.memory_space<vmem>>, vector<1x2x32xf32>
    %101 = vector.shape_cast %100 : vector<1x2x32xf32> to vector<2x32xf32>
    %c2_56 = arith.constant 2 : index
    %c0_57 = arith.constant 0 : index
    %c0_58 = arith.constant 0 : index
    %102 = vector.load %arg3[%c2_56, %c0_57, %c0_58] : memref<3x2x32xf32, #tpu.memory_space<vmem>>, vector<1x2x32xf32>
    %103 = vector.shape_cast %102 : vector<1x2x32xf32> to vector<2x32xf32>
    %c2_59 = arith.constant 2 : index
    %c0_60 = arith.constant 0 : index
    %c0_61 = arith.constant 0 : index
    %104 = vector.load %arg4[%c2_59, %c0_60, %c0_61] : memref<3x32x128xf32, #tpu.memory_space<vmem>>, vector<1x32x128xf32>
    %105 = vector.shape_cast %104 : vector<1x32x128xf32> to vector<32x128xf32>
    %cst_62 = arith.constant dense<0.000000e+00> : vector<2x128xf32>
    %106 = tpu.matmul %93, %105, %cst_62 {dimension_numbers = #tpu.dot_dimension_numbers<[1], [0], [0], [1], [0, 0, 1, 1], [], []>} : vector<2x32xf32>, vector<32x128xf32>, vector<2x128xf32> -> vector<2x128xf32>
    %c2_63 = arith.constant 2 : index
    %c0_64 = arith.constant 0 : index
    %c0_65 = arith.constant 0 : index
    %107 = vector.load %arg5[%c2_63, %c0_64, %c0_65] : memref<3x32x128xf32, #tpu.memory_space<vmem>>, vector<1x32x128xf32>
    %108 = vector.shape_cast %107 : vector<1x32x128xf32> to vector<32x128xf32>
    %cst_66 = arith.constant dense<0.000000e+00> : vector<2x128xf32>
    %109 = tpu.matmul %101, %108, %cst_66 {dimension_numbers = #tpu.dot_dimension_numbers<[1], [0], [0], [1], [0, 0, 1, 1], [], []>} : vector<2x32xf32>, vector<32x128xf32>, vector<2x128xf32> -> vector<2x128xf32>
    %110 = arith.addf %106, %109 : vector<2x128xf32>
    %c2_67 = arith.constant 2 : index
    %c0_68 = arith.constant 0 : index
    %c0_69 = arith.constant 0 : index
    %111 = vector.load %arg6[%c2_67, %c0_68, %c0_69] : memref<3x1x128xf32, #tpu.memory_space<vmem>>, vector<1x1x128xf32>
    %112 = vector.shape_cast %111 : vector<1x1x128xf32> to vector<1x128xf32>
    %113 = vector.broadcast %112 : vector<1x128xf32> to vector<2x128xf32>
    %114 = arith.addf %110, %113 : vector<2x128xf32>
    %115 = vector.extract_strided_slice %114 {offsets = [0, 0], sizes = [2, 32], strides = [1, 1]} : vector<2x128xf32> to vector<2x32xf32>
    %116 = arith.negf %115 : vector<2x32xf32>
    %117 = math.exp %116 : vector<2x32xf32>
    %cst_70 = arith.constant 1.000000e+00 : f32
    %118 = vector.broadcast %cst_70 : f32 to vector<2x32xf32>
    %119 = arith.addf %118, %117 : vector<2x32xf32>
    %120 = arith.divf %118, %119 : vector<2x32xf32>
    %121 = vector.extract_strided_slice %114 {offsets = [0, 32], sizes = [2, 32], strides = [1, 1]} : vector<2x128xf32> to vector<2x32xf32>
    %122 = arith.negf %121 : vector<2x32xf32>
    %123 = math.exp %122 : vector<2x32xf32>
    %cst_71 = arith.constant 1.000000e+00 : f32
    %124 = vector.broadcast %cst_71 : f32 to vector<2x32xf32>
    %125 = arith.addf %124, %123 : vector<2x32xf32>
    %126 = arith.divf %124, %125 : vector<2x32xf32>
    %127 = vector.extract_strided_slice %114 {offsets = [0, 64], sizes = [2, 32], strides = [1, 1]} : vector<2x128xf32> to vector<2x32xf32>
    %128 = arith.negf %127 : vector<2x32xf32>
    %129 = math.exp %128 : vector<2x32xf32>
    %cst_72 = arith.constant 1.000000e+00 : f32
    %130 = vector.broadcast %cst_72 : f32 to vector<2x32xf32>
    %131 = arith.addf %130, %129 : vector<2x32xf32>
    %132 = arith.divf %130, %131 : vector<2x32xf32>
    %133 = vector.extract_strided_slice %114 {offsets = [0, 96], sizes = [2, 32], strides = [1, 1]} : vector<2x128xf32> to vector<2x32xf32>
    %134 = math.tanh %133 : vector<2x32xf32>
    %135 = arith.mulf %120, %103 : vector<2x32xf32>
    %136 = arith.mulf %126, %134 : vector<2x32xf32>
    %137 = arith.addf %135, %136 : vector<2x32xf32>
    %138 = math.tanh %137 : vector<2x32xf32>
    %139 = arith.mulf %132, %138 : vector<2x32xf32>
    %c2_73 = arith.constant 2 : index
    %c0_74 = arith.constant 0 : index
    %c0_75 = arith.constant 0 : index
    %140 = vector.load %arg10[%c2_73, %c0_74, %c0_75] : memref<3x2x32xf32, #tpu.memory_space<vmem>>, vector<1x2x32xf32>
    %141 = vector.shape_cast %140 : vector<1x2x32xf32> to vector<2x32xf32>
    %142 = vector.shape_cast %139 : vector<2x32xf32> to vector<1x2x32xf32>
    tpu.vector_store %arg10[%c2_73, %c0_74, %c0_75], %142 {strides = array<i32>} : memref<3x2x32xf32, #tpu.memory_space<vmem>>, vector<1x2x32xf32>,
    %c2_76 = arith.constant 2 : index
    %c0_77 = arith.constant 0 : index
    %c0_78 = arith.constant 0 : index
    %143 = vector.load %arg11[%c2_76, %c0_77, %c0_78] : memref<3x2x32xf32, #tpu.memory_space<vmem>>, vector<1x2x32xf32>
    %144 = vector.shape_cast %143 : vector<1x2x32xf32> to vector<2x32xf32>
    %145 = vector.shape_cast %137 : vector<2x32xf32> to vector<1x2x32xf32>
    tpu.vector_store %arg11[%c2_76, %c0_77, %c0_78], %145 {strides = array<i32>} : memref<3x2x32xf32, #tpu.memory_space<vmem>>, vector<1x2x32xf32>,
    %c0_i32_79 = arith.constant 0 : i32
    %146 = arith.cmpi slt, %arg0, %c0_i32_79 : i32
    %147 = arith.extui %146 : i1 to i32
    %c0_i32_80 = arith.constant 0 : i32
    %148 = arith.cmpi ne, %147, %c0_i32_80 : i32
    scf.if %148 {
      %c0_83 = arith.constant 0 : index
      %c0_84 = arith.constant 0 : index
      %152 = vector.load %arg12[%c0_83, %c0_84] : memref<2x32xf32, #tpu.memory_space<vmem>>, vector<2x32xf32>
      tpu.vector_store %arg12[%c0_83, %c0_84], %139 {strides = array<i32>} : memref<2x32xf32, #tpu.memory_space<vmem>>, vector<2x32xf32>,
    } else {
    }
    %c0_i32_81 = arith.constant 0 : i32
    %149 = arith.cmpi eq, %arg0, %c0_i32_81 : i32
    %150 = arith.extui %149 : i1 to i32
    %c0_i32_82 = arith.constant 0 : i32
    %151 = arith.cmpi ne, %150, %c0_i32_82 : i32
    scf.if %151 {
      %c0_i32_83 = arith.constant 0 : i32
      %152 = tpu.memref_slice %arg15[%c0_i32_83] : memref<2x!tpu.dma_semaphore, #tpu.memory_space<semaphore_mem>> -> memref<1x!tpu.dma_semaphore, #tpu.memory_space<semaphore_mem>>
      %153 = tpu.memref_squeeze %152 : memref<1x!tpu.dma_semaphore, #tpu.memory_space<semaphore_mem>> -> memref<!tpu.dma_semaphore, #tpu.memory_space<semaphore_mem>>
      tpu.wait_dma2 semaphore(%153 : memref<!tpu.dma_semaphore, #tpu.memory_space<semaphore_mem>>) src(%arg7 : memref<32x32xf32, #tpu.memory_space<any>>) dst(%arg13 : memref<32x32xf32, #tpu.memory_space<vmem>>)
      %c1_i32 = arith.constant 1 : i32
      %154 = tpu.memref_slice %arg15[%c1_i32] : memref<2x!tpu.dma_semaphore, #tpu.memory_space<semaphore_mem>> -> memref<1x!tpu.dma_semaphore, #tpu.memory_space<semaphore_mem>>
      %155 = tpu.memref_squeeze %154 : memref<1x!tpu.dma_semaphore, #tpu.memory_space<semaphore_mem>> -> memref<!tpu.dma_semaphore, #tpu.memory_space<semaphore_mem>>
      tpu.wait_dma2 semaphore(%155 : memref<!tpu.dma_semaphore, #tpu.memory_space<semaphore_mem>>) src(%arg8 : memref<1x32xf32, #tpu.memory_space<any>>) dst(%arg14 : memref<1x32xf32, #tpu.memory_space<vmem>>)
      %c0_84 = arith.constant 0 : index
      %c0_85 = arith.constant 0 : index
      %156 = vector.load %arg13[%c0_84, %c0_85] : memref<32x32xf32, #tpu.memory_space<vmem>>, vector<32x32xf32>
      %cst_86 = arith.constant dense<0.000000e+00> : vector<2x32xf32>
      %157 = tpu.matmul %139, %156, %cst_86 {dimension_numbers = #tpu.dot_dimension_numbers<[1], [0], [0], [1], [0, 0, 1, 1], [], []>} : vector<2x32xf32>, vector<32x32xf32>, vector<2x32xf32> -> vector<2x32xf32>
      %c0_87 = arith.constant 0 : index
      %c0_88 = arith.constant 0 : index
      %158 = vector.load %arg14[%c0_87, %c0_88] : memref<1x32xf32, #tpu.memory_space<vmem>>, vector<1x32xf32>
      %159 = vector.broadcast %158 : vector<1x32xf32> to vector<2x32xf32>
      %160 = arith.addf %157, %159 : vector<2x32xf32>
      %161 = math.tanh %160 : vector<2x32xf32>
      %c0_89 = arith.constant 0 : index
      %c0_90 = arith.constant 0 : index
      %162 = vector.load %arg9[%c0_89, %c0_90] : memref<2x32xf32, #tpu.memory_space<vmem>>, vector<2x32xf32>
      tpu.vector_store %arg9[%c0_89, %c0_90], %161 {strides = array<i32>} : memref<2x32xf32, #tpu.memory_space<vmem>>, vector<2x32xf32>,
    } else {
    }
    return
  }
  func.func @transform_0(%arg0: i32) -> (i32, i32) {
    %c0_i32 = arith.constant 0 : i32
    %c0_i32_0 = arith.constant 0 : i32
    %c0_i32_1 = arith.constant 0 : i32
    return %c0_i32, %c0_i32_0 : i32, i32
  }
  func.func @transform_1(%arg0: i32) -> (i32, i32, i32) {
    %c0_i32 = arith.constant 0 : i32
    %c0_i32_0 = arith.constant 0 : i32
    %c0_i32_1 = arith.constant 0 : i32
    return %arg0, %c0_i32, %c0_i32_0 : i32, i32, i32
  }
  func.func @transform_2(%arg0: i32) -> (i32, i32, i32) {
    %c0_i32 = arith.constant 0 : i32
    %c0_i32_0 = arith.constant 0 : i32
    %c0_i32_1 = arith.constant 0 : i32
    return %arg0, %c0_i32, %c0_i32_0 : i32, i32, i32
  }
  func.func @transform_3(%arg0: i32) -> (i32, i32, i32) {
    %c0_i32 = arith.constant 0 : i32
    %c0_i32_0 = arith.constant 0 : i32
    %c0_i32_1 = arith.constant 0 : i32
    return %arg0, %c0_i32, %c0_i32_0 : i32, i32, i32
  }
  func.func @transform_4(%arg0: i32) -> (i32, i32, i32) {
    %c0_i32 = arith.constant 0 : i32
    %c0_i32_0 = arith.constant 0 : i32
    %c0_i32_1 = arith.constant 0 : i32
    return %arg0, %c0_i32, %c0_i32_0 : i32, i32, i32
  }
  func.func @transform_5(%arg0: i32) -> (i32, i32, i32) {
    %c0_i32 = arith.constant 0 : i32
    %c0_i32_0 = arith.constant 0 : i32
    %c0_i32_1 = arith.constant 0 : i32
    return %arg0, %c0_i32, %c0_i32_0 : i32, i32, i32
  }
  func.func @transform_8(%arg0: i32) -> (i32, i32) {
    %c0_i32 = arith.constant 0 : i32
    %c0_i32_0 = arith.constant 0 : i32
    %c0_i32_1 = arith.constant 0 : i32
    return %c0_i32, %c0_i32_0 : i32, i32
  }
  func.func @transform_9(%arg0: i32) -> (i32, i32, i32) {
    %c0_i32 = arith.constant 0 : i32
    %c0_i32_0 = arith.constant 0 : i32
    %c0_i32_1 = arith.constant 0 : i32
    return %arg0, %c0_i32, %c0_i32_0 : i32, i32, i32
  }
  func.func @transform_10(%arg0: i32) -> (i32, i32, i32) {
    %c0_i32 = arith.constant 0 : i32
    %c0_i32_0 = arith.constant 0 : i32
    %c0_i32_1 = arith.constant 0 : i32
    return %arg0, %c0_i32, %c0_i32_0 : i32, i32, i32
  }
}

</mosaic_0001>

<bundles_post_ra>
// kernel: tpu_custom_call.1
= control target key start
LH: loop header
LB: loop body
LE: loop exit
PB: predicated region body
PF: predicated region fallthrough
CT: control target
= control target key end

     0   :  { %16 = vsyncpa [#allocation7], 0  ;;  %s1458_s0 = inlined_call_operand.vmem [shape: f32[2,32], index: 0, kind: input, shape index: {}]   ;;  %s1459_s1 = inlined_call_operand.hbm [shape: f32[3,2,32], index: 1, kind: input, shape index: {}, may-alias: {1,9}]   ;;  %s1460_s2 = inlined_call_operand.hbm [shape: f32[3,2,32], index: 2, kind: input, shape index: {}, may-alias: {2,10}]   ;;  %s1461_s3 = inlined_call_operand.hbm [shape: f32[3,32,128], index: 3, kind: input, shape index: {}]   ;;  %s1462_s4 = inlined_call_operand.hbm [shape: f32[3,32,128], index: 4, kind: input, shape index: {}]   ;;  %s1463_s5 = inlined_call_operand.vmem [shape: f32[3,1,128], index: 5, kind: input, shape index: {}]   ;;  %s1464_s6 = inlined_call_operand.hbm [shape: f32[32,32], index: 6, kind: input, shape index: {}]   ;;  %s1465_s7 = inlined_call_operand.vmem [shape: f32[1,32], index: 7, kind: input, shape index: {}]   ;;  %s1466_s8 = inlined_call_operand.hbm [shape: f32[2,32], index: 8, kind: output, shape index: {0}]   ;;  %s1467_s9 = inlined_call_operand.hbm [shape: f32[3,2,32], index: 9, kind: output, shape index: {1}, may-alias: {1,9}]   ;;  %s1468_s10 = inlined_call_operand.hbm [shape: f32[3,2,32], index: 10, kind: output, shape index: {2}, may-alias: {2,10}]  }
   0x1   :  { %17 = vsyncpa [#allocation10], 0 }
   0x2   :  { %18 = vsyncpa [#allocation13], 0 }
   0x3   :  { %19 = vsyncpa [#allocation8], 0 }
   0x4   :  { %20 = vsyncpa [#allocation16], 0  ;;  %s1265_s13 = smov [#allocation9]   ;;  %s1266_s15 = smov [#allocation6]  }
   0x5   :  { %s40_s14 = sshll.u32 %s1265_s13, 4  ;;  %s28_s16 = sshll.u32 %s1266_s15, 4  ;;  %s41_s14 = int_to_ptr.vmem [resolvable:$true] %s40_s14  ;;  %s29_s16 = int_to_ptr.vmem [resolvable:$true] %s28_s16 }
   0x6   :  { %s1099_s17 = scalar_lea.vmem %s41_s14, 96  ;;  %p1104_p1 = scmp.lt.s32.totalorder %s41_s14, %s41_s14 }
   0x7   :  { %p1100_p0 = scmp.ne.s32.totalorder %s41_s14, %s1099_s17  ;;  %p1105_p2 = scmp.lt.s32.totalorder %s1099_s17, %s1099_s17 }
   0x9   :  { %p1106_p3 = por %p1105_p2, %p1104_p1 }
   0xb   :  { %p1107_p4 = pnand %p1106_p3, %p1100_p0 }
   0xd   :  { %1110 = shalt.err (!%p1107_p4)
}
   0xe   :  { %s1267_s18 = smov 32   ;;  %s1268_s19 = smov 2  }
   0xf   :  { %46 = dma.hbm_to_vmem [thread:$0]  %s1460_s2, 96, %s41_s14, [#allocation10], %s1267_s18, %s1267_s18, %s1268_s19  }
  0x10   :  { %s1119_s22 = scalar_lea.vmem %s29_s16, 96  ;;  %p1124_p6 = scmp.lt.s32.totalorder %s29_s16, %s29_s16 }
  0x11   :  { %p1120_p5 = scmp.ne.s32.totalorder %s29_s16, %s1119_s22  ;;  %p1125_p7 = scmp.lt.s32.totalorder %s1119_s22, %s1119_s22 }
  0x13   :  { %p1126_p8 = por %p1125_p7, %p1124_p6 }
  0x15   :  { %p1127_p9 = pnand %p1126_p8, %p1120_p5 }
  0x17   :  { %1130 = shalt.err (!%p1127_p9)
}
  0x18   :  { %34 = dma.hbm_to_vmem [thread:$0]  %s1459_s1, 96, %s29_s16, [#allocation7], %s1267_s18, %s1267_s18, %s1268_s19  }
  0x19   :  { %s1269_s25 = smov [#allocation11]  }
  0x1a   :  { %s52_s26 = sshll.u32 %s1269_s25, 4  ;;  %s53_s26 = int_to_ptr.vmem [resolvable:$true] %s52_s26 }
  0x1b   :  { %s1139_s27 = scalar_lea.vmem %s53_s26, 1536  ;;  %p1144_p11 = scmp.lt.s32.totalorder %s53_s26, %s53_s26 }
  0x1c   :  { %p1140_p10 = scmp.ne.s32.totalorder %s53_s26, %s1139_s27  ;;  %p1145_p12 = scmp.lt.s32.totalorder %s1139_s27, %s1139_s27 }
  0x1e   :  { %p1146_p13 = por %p1145_p12, %p1144_p11 }
  0x20   :  { %p1147_p0 = pnand %p1146_p13, %p1140_p10 }
  0x22   :  { %1150 = shalt.err (!%p1147_p0)
}
  0x23   :  { %s1270_s2 = smov 128   ;;  %s1271_s28 = smov 8  }
  0x24   :  { %58 = dma.hbm_to_vmem [thread:$0]  %s1461_s3, 1536, %s53_s26, [#allocation10], %s1270_s2, %s1270_s2, %s1271_s28  }
  0x25   :  { %s1272_s11 = smov [#allocation12]  }
  0x26   :  { %s64_s12 = sshll.u32 %s1272_s11, 4  ;;  %s65_s12 = int_to_ptr.vmem [resolvable:$true] %s64_s12 }
  0x27   :  { %s1159_s1 = scalar_lea.vmem %s65_s12, 1536  ;;  %p1164_p2 = scmp.lt.s32.totalorder %s65_s12, %s65_s12 }
  0x28   :  { %p1160_p1 = scmp.ne.s32.totalorder %s65_s12, %s1159_s1  ;;  %p1165_p3 = scmp.lt.s32.totalorder %s1159_s1, %s1159_s1 }
  0x2a   :  { %p1166_p4 = por %p1165_p3, %p1164_p2 }
  0x2c   :  { %p1167_p5 = pnand %p1166_p4, %p1160_p1 }
  0x2e   :  { %1170 = shalt.err (!%p1167_p5)
}
  0x2f   :  { %70 = dma.hbm_to_vmem [thread:$0]  %s1462_s4, 1536, %s65_s12, [#allocation13], %s1270_s2, %s1270_s2, %s1271_s28  }
  0x30   :  { %1251 = dma.done.wait [#allocation7], 96  }
  0x31   :  { %1252 = vsyncadd [#allocation7], 4294967200 }
  0x32   :  { %1253 = dma.done.wait [#allocation10], 1632  }
  0x33   :  { %1254 = vsyncadd [#allocation10], 4294965664 }
  0x34   :  { %1255 = dma.done.wait [#allocation13], 1536  }
  0x35   :  { %1256 = vsyncadd [#allocation13], 4294965760  ;;  %vm90_vm0 = vcmask 254976   ;;  %v1273_v0 = vmov 0.0   ;;  %s1274_s3 = smov [#allocation3]  }
  0x36   :  { %92 = vst.msk [vmem:[#allocation14] sm:$0x3] %vm90_vm0, %v1273_v0  ;;  %s100_s15 = sshll.u32 %s1274_s3, 4  ;;  %s101_s15 = int_to_ptr.vmem [resolvable:$true] %s100_s15 }
  0x37   :  { %s1179_s16 = scalar_lea.vmem %s101_s15, 512  ;;  %p1184_p7 = scmp.lt.s32.totalorder %s101_s15, %s101_s15 }
  0x38   :  { %p1180_p6 = scmp.ne.s32.totalorder %s101_s15, %s1179_s16  ;;  %p1185_p8 = scmp.lt.s32.totalorder %s1179_s16, %s1179_s16 }
  0x3a   :  { %p1186_p9 = por %p1185_p8, %p1184_p7 }
  0x3c   :  { %p1187_p10 = pnand %p1186_p9, %p1180_p6 }
  0x3e   :  { %1190 = shalt.err (!%p1187_p10)  }
  0x3f   :  { %103 = dma.hbm_to_vmem [thread:$0]  %s1464_s6, 512, %s101_s15, [#allocation5]  ;;  %v89_v1 = vld [vmem:[%s1458_s0] sm:$0x3] }
  0x40   :  { %v123_v2 = vld [vmem:[%s1465_s7] sm:$0x1]  ;;  %91 = vst.msk [vmem:[#allocation2] sm:$0x3] %vm90_vm0, %v89_v1 }
  0x41   :  { %124 = vst [vmem:[#allocation4] sm:$0x1] %v123_v2 }
  0x42   :  { %150 = vsyncadd [#allocation5 + $0x1], 16  ;;  %972 = vmatprep.subr.mxu0 %v1273_v0  ;;  %983 = vmatprep.subr.mxu1 %v1273_v0  ;;  %v161_v3 = vld [vmem:[#allocation12 + $0x18] sm:$0xff]  ;;  %v160_v5 = vld [vmem:[#allocation12 + $0x10] sm:$0xff]  ;;  %vm162_vm1 = vcmask 261120   ;;  %vm1275_vm2 = vmmov 0  }
  0x43   :  { %v157_v4 = vld [vmem:[#allocation11 + $0x18] sm:$0xff]  ;;  %973 = vmatpush3.msra.mxu0 %v161_v3  ;;  %v156_v6 = vld [vmem:[#allocation11 + $0x10] sm:$0xff]  ;;  %v159_v7 = vld [vmem:[#allocation12 + $0x8] sm:$0xff]  ;;  %980 = vmatprep.mubr.msk.f32.mxu0 %vm1275_vm2, %v1273_v0  ;;  %s1276_s7 = smov 64   ;;  %s1277_s24 = smov 96  }
  0x44   :  { %984 = vmatpush3.msra.mxu1 %v157_v4  ;;  %974 = vmatprep.subr.mxu0 %v1273_v0  ;;  %v155_v8 = vld [vmem:[#allocation11 + $0x8] sm:$0xff]  ;;  %v158_v9 = vld [vmem:[#allocation12] sm:$0xff]  ;;  %v152_v11 = vld [vmem:[#allocation6] sm:$0x3] }
  0x45   :  { %985 = vmatprep.subr.mxu1 %v1273_v0  ;;  %975 = vmatpush3.msra.mxu0 %v160_v5  ;;  %v154_v10 = vld [vmem:[#allocation11] sm:$0xff]  ;;  %v921_v15 = vld [vmem:[%s1463_s5] ss:$0 sm:$0xff]  ;;  %v153_v27 = vld [vmem:[#allocation9] sm:$0x3] }
  0x46   :  { %986 = vmatpush3.msra.mxu1 %v156_v6  ;;  %976 = vmatprep.subr.mxu0 %v1273_v0  ;;  %v361_v31 = vld [vmem:[#allocation12 + $0x38] sm:$0xff]  ;;  %v360_v32 = vld [vmem:[#allocation12 + $0x30] sm:$0xff]  ;;  %v359_v35 = vld [vmem:[#allocation12 + $0x28] sm:$0xff] }
  0x47   :  { %987 = vmatprep.subr.mxu1 %v1273_v0  ;;  %977 = vmatpush3.msra.mxu0 %v159_v7  ;;  %v151_v12 = vld [vmem:[#allocation2] sm:$0x3]  ;;  %v356_v33 = vld [vmem:[#allocation11 + $0x38] sm:$0xff]  ;;  %v354_v36 = vld [vmem:[#allocation11 + $0x28] sm:$0xff] }
  0x48   :  { %988 = vmatpush3.msra.mxu1 %v155_v8  ;;  %978 = vmatprep.subr.mxu0 %v1273_v0  ;;  %v355_v34 = vld [vmem:[#allocation11 + $0x30] sm:$0xff]  ;;  %v358_v37 = vld [vmem:[#allocation12 + $0x20] sm:$0xff]  ;;  %v351_v58 = vld [vmem:[#allocation9 + $0x2] sm:$0x3] }
  0x49   :  { %989 = vmatprep.subr.mxu1 %v1273_v0  ;;  %979 = vmatpush3.msra.mxu0 %v158_v9  ;;  %v353_v38 = vld [vmem:[#allocation11 + $0x20] sm:$0xff]  ;;  %v349_v39 = vld [vmem:[#allocation6 + $0x2] sm:$0x3]  ;;  %v926_v47 = vld [vmem:[%s1463_s5 + $0x1] ss:$0 sm:$0xff] }
  0x4a   :  { %990 = vmatpush3.msra.mxu1 %v154_v10  ;;  %991 = vmatprep.mubr.msk.f32.mxu1 %vm1275_vm2, %v1273_v0  ;;  %v561_v62 = vld [vmem:[#allocation12 + $0x58] sm:$0xff]  ;;  %v560_v63 = vld [vmem:[#allocation12 + $0x50] sm:$0xff]  ;;  %v559_v3 = vld [vmem:[#allocation12 + $0x48] sm:$0xff] }
  0x4b   :  { %981 = vmatmul.mubr.msk.f32.vlgmr.msra.gmra.mxu0 %vm162_vm1, %v152_v11  ;;  %992 = vmatmul.mubr.msk.f32.vlgmr.msra.gmra.mxu1 %vm162_vm1, %v151_v12  ;;  %v556_v1 = vld [vmem:[#allocation11 + $0x58] sm:$0xff]  ;;  %v555_v2 = vld [vmem:[#allocation11 + $0x50] sm:$0xff]  ;;  %v554_v4 = vld [vmem:[#allocation11 + $0x48] sm:$0xff] }
  0x4c   :  { %994 = vmatprep.subr.mxu0 %v1273_v0  ;;  %1005 = vmatprep.subr.mxu1 %v1273_v0  ;;  %v558_v5 = vld [vmem:[#allocation12 + $0x40] sm:$0xff]  ;;  %v549_v7 = vld [vmem:[#allocation6 + $0x4] sm:$0x3] }
  0x4d   :  { %1002 = vmatprep.mubr.msk.f32.mxu0 %vm1275_vm2, %v1273_v0  ;;  %1013 = vmatprep.mubr.msk.f32.mxu1 %vm1275_vm2, %v1273_v0  ;;  %v553_v6 = vld [vmem:[#allocation11 + $0x40] sm:$0xff] }
  0x4e   :  { %995 = vmatpush3.msra.mxu0 %v361_v31  ;;  %1006 = vmatpush3.msra.mxu1 %v356_v33 }
  0x4f   :  { %996 = vmatprep.subr.mxu0 %v1273_v0  ;;  %1007 = vmatprep.subr.mxu1 %v1273_v0 }
  0x50   :  { %997 = vmatpush3.msra.mxu0 %v360_v32  ;;  %1008 = vmatpush3.msra.mxu1 %v355_v34 }
  0x51   :  { %998 = vmatprep.subr.mxu0 %v1273_v0  ;;  %1009 = vmatprep.subr.mxu1 %v1273_v0 }
  0x52   :  { %999 = vmatpush3.msra.mxu0 %v359_v35  ;;  %1010 = vmatpush3.msra.mxu1 %v354_v36 }
  0x53   :  { %1000 = vmatprep.subr.mxu0 %v1273_v0  ;;  %1011 = vmatprep.subr.mxu1 %v1273_v0 }
  0x54   :  { %1001 = vmatpush3.msra.mxu0 %v358_v37  ;;  %1012 = vmatpush3.msra.mxu1 %v353_v38 }
  0x55   :  { %1003 = vmatmul.mubr.msk.f32.vlgmr.msra.gmra.mxu0 %vm162_vm1, %v349_v39  ;;  %1016 = vmatprep.subr.mxu0 %v1273_v0 }
  0x56   :  { %1027 = vmatprep.subr.mxu1 %v1273_v0  ;;  %1024 = vmatprep.mubr.msk.f32.mxu0 %vm1275_vm2, %v1273_v0 }
  0x57   :  { %1017 = vmatpush3.msra.mxu0 %v561_v62 }
  0x58   :  { %1018 = vmatprep.subr.mxu0 %v1273_v0 }
  0x59   :  { %1019 = vmatpush3.msra.mxu0 %v560_v63 }
  0x5a   :  { %1020 = vmatprep.subr.mxu0 %v1273_v0 }
  0x5b   :  { %1021 = vmatpush3.msra.mxu0 %v559_v3 }
  0x5c   :  { %1022 = vmatprep.subr.mxu0 %v1273_v0 }
  0x5d   :  { %1023 = vmatpush3.msra.mxu0 %v558_v5 }
  0x5e   :  { %1025 = vmatmul.mubr.msk.f32.vlgmr.msra.gmra.mxu0 %vm162_vm1, %v549_v7 }
 0x10b   :  { %v232_v13 = vpop.f32.mrf.mxu0  ;;  %v305_v14 = vpop.f32.mrf.mxu1 }
 0x10c   :  { %v306_v16 = vadd.f32 %v305_v14, %v232_v13 }
 0x10d   :  { %v982_v17 = vpop.f32.mrf.mxu0  ;;  %v993_v18 = vpop.f32.mrf.mxu1 }
 0x10e   :  { %v316_v19 = vadd.f32 %v921_v15, %v306_v16  ;;  %v931_v15 = vld [vmem:[%s1463_s5 + $0x2] ss:$0 sm:$0xff] }
 0x110   :  { %1065 = vtanh.f32 %v316_v19  ;;  %v922_v21 = vmul.f32 -1.442695, %v316_v19 }
 0x112   :  { %1067 = vpow2.f32 %v922_v21 }
 0x115   :  { %v431_v43 = vpop.f32.mrf.mxu0 }
 0x117   :  { %v1004_v44 = vpop.f32.mrf.mxu0 }
 0x11d   :  { %v1066_v20 = vpop.eup %1065 }
 0x11e   :  { %326 = vrot.lane.b32.xlu0 %v1066_v20, %s1276_s7  ;;  %v631_v11 = vpop.f32.mrf.mxu0 }
 0x11f   :  { %v1068_v22 = vpop.eup %1067 }
 0x120   :  { %v320_v23 = vadd.f32 1.0, %v1068_v22  ;;  %v1026_v12 = vpop.f32.mrf.mxu0 }
 0x122   :  { %1069 = vrcp.f32 %v320_v23 }
 0x12f   :  { %v1070_v24 = vpop.eup %1069 }
 0x130   :  { %v324_v28 = vmul.f32 %v1070_v24, %v153_v27 }
 0x190   :  { %v327_v25 = vpop.permute.xlu0 %326 }
 0x191   :  { %v329_v26 = vmul.f32 %v1070_v24, %v327_v25 }
 0x193   :  { %331 = vrot.lane.b32.xlu0 %v329_v26, %s1277_s24  ;;  %v551_v26 = vld [vmem:[#allocation9 + $0x4] sm:$0x3] }
 0x205   :  { %v332_v29 = vpop.permute.xlu0 %331 }
 0x206   :  { %v334_v30 = vadd.f32 %v332_v29, %v324_v28 }
 0x208   :  { %1071 = vtanh.f32 %v334_v30  ;;  %347 = vst.msk [vmem:[#allocation17] sm:$0x3] %vm90_vm0, %v334_v30 }
 0x215   :  { %v1072_v40 = vpop.eup %1071 }
 0x216   :  { %337 = vrot.lane.b32.xlu1 %v1072_v40, %s1276_s7 }
 0x288   :  { %v338_v41 = vpop.permute.xlu1 %337 }
 0x289   :  { %v340_v42 = vmul.f32 %v1070_v24, %v338_v41 }
 0x28b   :  { %342 = vrot.lane.b32.xlu1 %v340_v42, %s1276_s7 }
 0x2fd   :  { %v343_v45 = vpop.permute.xlu1 %342 }
 0x2fe   :  { %346 = vst.msk [vmem:[#allocation15] sm:$0x3] %vm90_vm0, %v343_v45  ;;  %1014 = vmatmul.mubr.msk.f32.vlgmr.msra.gmra.mxu1 %vm162_vm1, %v343_v45 }
 0x2ff   :  { %1035 = vmatprep.mubr.msk.f32.mxu1 %vm1275_vm2, %v1273_v0  ;;  %1028 = vmatpush3.msra.mxu1 %v556_v1 }
 0x300   :  { %1029 = vmatprep.subr.mxu1 %v1273_v0 }
 0x301   :  { %1030 = vmatpush3.msra.mxu1 %v555_v2 }
 0x302   :  { %1031 = vmatprep.subr.mxu1 %v1273_v0 }
 0x303   :  { %1032 = vmatpush3.msra.mxu1 %v554_v4 }
 0x304   :  { %1033 = vmatprep.subr.mxu1 %v1273_v0 }
 0x305   :  { %1034 = vmatpush3.msra.mxu1 %v553_v6 }
 0x3be   :  { %v503_v46 = vpop.f32.mrf.mxu1 }
 0x3bf   :  { %v504_v48 = vadd.f32 %v503_v46, %v431_v43 }
 0x3c0   :  { %v1015_v49 = vpop.f32.mrf.mxu1 }
 0x3c1   :  { %v515_v50 = vadd.f32 %v926_v47, %v504_v48 }
 0x3c3   :  { %1073 = vtanh.f32 %v515_v50  ;;  %v927_v52 = vmul.f32 -1.442695, %v515_v50 }
 0x3c5   :  { %1075 = vpow2.f32 %v927_v52 }
 0x3d0   :  { %v1074_v51 = vpop.eup %1073 }
 0x3d1   :  { %525 = vrot.lane.b32.xlu0 %v1074_v51, %s1276_s7 }
 0x3d2   :  { %v1076_v53 = vpop.eup %1075 }
 0x3d3   :  { %v519_v54 = vadd.f32 1.0, %v1076_v53 }
 0x3d5   :  { %1077 = vrcp.f32 %v519_v54 }
 0x3e2   :  { %v1078_v55 = vpop.eup %1077 }
 0x3e3   :  { %v523_v59 = vmul.f32 %v1078_v55, %v351_v58 }
 0x443   :  { %v526_v56 = vpop.permute.xlu0 %525 }
 0x444   :  { %v528_v57 = vmul.f32 %v1078_v55, %v526_v56 }
 0x446   :  { %530 = vrot.lane.b32.xlu1 %v528_v57, %s1277_s24 }
 0x4b8   :  { %v531_v60 = vpop.permute.xlu1 %530 }
 0x4b9   :  { %v533_v61 = vadd.f32 %v531_v60, %v523_v59 }
 0x4bb   :  { %1079 = vtanh.f32 %v533_v61  ;;  %547 = vst.msk [vmem:[#allocation17 + $0x2] sm:$0x3] %vm90_vm0, %v533_v61 }
 0x4c8   :  { %v1080_v8 = vpop.eup %1079 }
 0x4c9   :  { %536 = vrot.lane.b32.xlu0 %v1080_v8, %s1276_s7 }
 0x53b   :  { %v537_v9 = vpop.permute.xlu0 %536 }
 0x53c   :  { %v539_v10 = vmul.f32 %v1078_v55, %v537_v9 }
 0x53e   :  { %541 = vrot.lane.b32.xlu1 %v539_v10, %s1276_s7 }
 0x5b0   :  { %v542_v13 = vpop.permute.xlu1 %541 }
 0x5b1   :  { %545 = vst.msk [vmem:[#allocation15 + $0x2] sm:$0x3] %vm90_vm0, %v542_v13  ;;  %1036 = vmatmul.mubr.msk.f32.vlgmr.msra.gmra.mxu1 %vm162_vm1, %v542_v13 }
 0x671   :  { %v703_v14 = vpop.f32.mrf.mxu1 }
 0x672   :  { %v704_v16 = vadd.f32 %v703_v14, %v631_v11 }
 0x673   :  { %v1037_v17 = vpop.f32.mrf.mxu1 }
 0x674   :  { %v715_v18 = vadd.f32 %v931_v15, %v704_v16 }
 0x676   :  { %1081 = vtanh.f32 %v715_v18  ;;  %v932_v20 = vmul.f32 -1.442695, %v715_v18 }
 0x678   :  { %1083 = vpow2.f32 %v932_v20 }
 0x683   :  { %v1082_v19 = vpop.eup %1081 }
 0x684   :  { %725 = vrot.lane.b32.xlu0 %v1082_v19, %s1276_s7 }
 0x685   :  { %v1084_v21 = vpop.eup %1083 }
 0x686   :  { %v719_v22 = vadd.f32 1.0, %v1084_v21 }
 0x688   :  { %1085 = vrcp.f32 %v719_v22 }
 0x695   :  { %v1086_v23 = vpop.eup %1085 }
 0x696   :  { %v723_v27 = vmul.f32 %v1086_v23, %v551_v26 }
 0x6f6   :  { %v726_v24 = vpop.permute.xlu0 %725 }
 0x6f7   :  { %v728_v25 = vmul.f32 %v1086_v23, %v726_v24 }
 0x6f9   :  { %730 = vrot.lane.b32.xlu1 %v728_v25, %s1277_s24 }
 0x76b   :  { %v731_v28 = vpop.permute.xlu1 %730 }
 0x76c   :  { %v733_v29 = vadd.f32 %v731_v28, %v723_v27 }
 0x76e   :  { %1087 = vtanh.f32 %v733_v29  ;;  %747 = vst.msk [vmem:[#allocation17 + $0x4] sm:$0x3] %vm90_vm0, %v733_v29 }
 0x77b   :  { %v1088_v30 = vpop.eup %1087 }
 0x77c   :  { %736 = vrot.lane.b32.xlu0 %v1088_v30, %s1276_s7 }
 0x7ee   :  { %v737_v31 = vpop.permute.xlu0 %736 }
 0x7ef   :  { %v739_v32 = vmul.f32 %v1086_v23, %v737_v31 }
 0x7f1   :  { %741 = vrot.lane.b32.xlu1 %v739_v32, %s1276_s7 }
 0x863   :  { %v742_v33 = vpop.permute.xlu1 %741 }
 0x864   :  { %745 = vst.msk [vmem:[#allocation15 + $0x4] sm:$0x3] %vm90_vm0, %v742_v33 }
 0x865   :  { %1257 = dma.done.wait [#allocation5], 512 }
 0x866   :  { %1258 = vsyncadd [#allocation5], 4294966784 }
 0x867   :  { %1259 = dma.done.wait [#allocation5 + $0x1], 16 }
 0x868   :  { %1260 = vsyncadd [#allocation5 + $0x1], 4294967280  ;;  %1038 = vmatprep.subr.mxu0 %v1273_v0  ;;  %1046 = vmatprep.mubr.msk.f32.mxu0 %vm1275_vm2, %v1273_v0  ;;  %v766_v34 = vld [vmem:[#allocation3 + $0x18] sm:$0xff]  ;;  %v765_v35 = vld [vmem:[#allocation3 + $0x10] sm:$0xff]  ;;  %s1278_s5 = smov [#allocation15]  }
 0x869   :  { %1039 = vmatpush3.msra.mxu0 %v766_v34  ;;  %v764_v36 = vld [vmem:[#allocation3 + $0x8] sm:$0xff]  ;;  %v763_v37 = vld [vmem:[#allocation3] sm:$0xff]  ;;  %s863_s28 = sshll.u32 %s1278_s5, 4  ;;  %s864_s28 = int_to_ptr.vmem [resolvable:$true] %s863_s28 }
 0x86a   :  { %1040 = vmatprep.subr.mxu0 %v1273_v0  ;;  %s1191_s29 = scalar_lea.vmem %s864_s28, 96  ;;  %p1196_p12 = scmp.lt.s32.totalorder %s864_s28, %s864_s28 }
 0x86b   :  { %1041 = vmatpush3.msra.mxu0 %v765_v35  ;;  %p1192_p11 = scmp.ne.s32.totalorder %s864_s28, %s1191_s29  ;;  %p1197_p13 = scmp.lt.s32.totalorder %s1191_s29, %s1191_s29 }
 0x86c   :  { %1042 = vmatprep.subr.mxu0 %v1273_v0 }
 0x86d   :  { %1043 = vmatpush3.msra.mxu0 %v764_v36  ;;  %p1198_p0 = por %p1197_p13, %p1196_p12 }
 0x86e   :  { %1044 = vmatprep.subr.mxu0 %v1273_v0 }
 0x86f   :  { %1045 = vmatpush3.msra.mxu0 %v763_v37  ;;  %p1199_p1 = pnand %p1198_p0, %p1192_p11 }
 0x870   :  { %1047 = vmatmul.mubr.msk.f32.vlgmr.msra.gmra.mxu0 %vm162_vm1, %v742_v33 }
 0x871   :  { %1202 = shalt.err (!%p1199_p1)
}
 0x872   :  { %869 = dma.vmem_to_hbm [thread:$0]  %s864_s28, 96, %s1467_s9, [#allocation16], %s1267_s18, %s1267_s18, %s1268_s19  }
 0x873   :  { %s1279_s12 = smov [#allocation17]  }
 0x874   :  { %s875_s1 = sshll.u32 %s1279_s12, 4  ;;  %s876_s1 = int_to_ptr.vmem [resolvable:$true] %s875_s1 }
 0x875   :  { %s1211_s13 = scalar_lea.vmem %s876_s1, 96  ;;  %p1216_p3 = scmp.lt.s32.totalorder %s876_s1, %s876_s1 }
 0x876   :  { %p1212_p2 = scmp.ne.s32.totalorder %s876_s1, %s1211_s13  ;;  %p1217_p4 = scmp.lt.s32.totalorder %s1211_s13, %s1211_s13 }
 0x878   :  { %p1218_p5 = por %p1217_p4, %p1216_p3 }
 0x87a   :  { %p1219_p6 = pnand %p1218_p5, %p1212_p2 }
 0x87c   :  { %1222 = shalt.err (!%p1219_p6)
}
 0x87d   :  { %881 = dma.vmem_to_hbm [thread:$0]  %s876_s1, 96, %s1468_s10, [#allocation16], %s1267_s18, %s1267_s18, %s1268_s19   ;;  %v933_v0 = vld [vmem:[#allocation4] ss:$0 sm:$0xff] }
 0x87e   :  { %s1280_s9 = smov [#allocation14]  }
 0x87f   :  { %s854_s15 = sshll.u32 %s1280_s9, 4  ;;  %s855_s15 = int_to_ptr.vmem [resolvable:$true] %s854_s15 }
 0x880   :  { %s1231_s16 = scalar_lea.vmem %s855_s15, 32  ;;  %p1236_p8 = scmp.lt.s32.totalorder %s855_s15, %s855_s15 }
 0x881   :  { %p1232_p7 = scmp.ne.s32.totalorder %s855_s15, %s1231_s16  ;;  %p1237_p9 = scmp.lt.s32.totalorder %s1231_s16, %s1231_s16 }
 0x883   :  { %p1238_p10 = por %p1237_p9, %p1236_p8 }
 0x885   :  { %p1239_p11 = pnand %p1238_p10, %p1232_p7 }
 0x930   :  { %v842_v38 = vpop.f32.mrf.mxu0 }
 0x931   :  { %v843_v39 = vadd.f32 %v933_v0, %v842_v38 }
 0x932   :  { %v1048_v40 = vpop.f32.mrf.mxu0 }
 0x933   :  { %1089 = vtanh.f32 %v843_v39 }
 0x940   :  { %v1090_v41 = vpop.eup %1089 }
 0x941   :  { %847 = vst.msk [vmem:[#allocation14] sm:$0x3] %vm90_vm0, %v1090_v41 }
 0x942   :  { %1242 = shalt.err (!%p1239_p11)
}
 0x943   :  { %857 = dma.vmem_to_hbm [thread:$0]  %s855_s15, 32, %s1466_s8, [#allocation8]  }
 0x944   :  { %1261 = dma.done.wait [#allocation8], 32  }
 0x945   :  { %1262 = vsyncadd [#allocation8], 4294967264 }
 0x946   :  { %1263 = dma.done.wait [#allocation16], 192  }
 0x947   :  { %1264 = vsyncadd [#allocation16], 4294967104 }
 0x948   :  { %891 = vsyncpa [#allocation7], 1 }
 0x949   :  { %892 = vsyncpa [#allocation10], 1 }
 0x94a   :  { %893 = vsyncpa [#allocation13], 1 }
 0x94b   :  { %894 = vsyncpa [#allocation8], 1 }
 0x94c   :  { %895 = vsyncpa [#allocation16], 1 }
 0x94d   :  { %896 = vsyncmov [#allocation5] }
 0x950   :  { %s897_s18 = vpop.sfrf %896 }
 0x951   :  { %p935_p12 = scmp.ne.s32.totalorder %s897_s18, 0 }
 0x953   :  { %901 = shalt.err (%p935_p12)  }
 0x954   :  { %903 = vsyncmov [#allocation5 + $0x1] }
 0x957   :  { %s904_s19 = vpop.sfrf %903 }
 0x958   :  { %p936_p13 = scmp.ne.s32.totalorder %s904_s19, 0 }
 0x95a   :  { %908 = shalt.err (%p936_p13)  }

</bundles_post_ra>
